<compile_context>
chip_gen: v6e
topology: v6e:2x2x1
jax: 0.10.0
libtpu: 0.0.40
codegen_flags: <defaults>
</compile_context>

<pallas_src>
import functools
import math

import jax
import jax.numpy as jnp
from jax import lax
from jax.experimental import pallas as pl
from jax.experimental.pallas import tpu as pltpu

_INV_SQRT2 = 1.0 / math.sqrt(2.0)
_TANH_C = math.sqrt(2.0 / math.pi)


# --------------------------------------------------------------------------
# kernels
# --------------------------------------------------------------------------
def _gelu(h, approximate):
    if approximate:
        # tanh-form GELU: a handful of VALU ops + 1 EUP tanh (EUP slot is
        # otherwise idle) instead of the ~20-op VPU polynomial lax.erf lowers
        # to.  ~1e-3 deviation from torch.nn.GELU's exact erf.
        return 0.5 * h * (1.0 + jnp.tanh(_TANH_C * (h + 0.044715 * h * h * h)))
    # exact GELU (matches torch.nn.GELU default)
    return 0.5 * h * (1.0 + lax.erf(h * _INV_SQRT2))


def _mlp_kernel_fused(x_ref, w1_ref, b1_ref, w2_ref, b2_ref, o_ref, *,
                      approximate):
    # Weights resident in VMEM (constant block index -> DMA'd once, reused for
    # every row tile).  No accumulator scratch, single store per row tile.
    x = x_ref[...]
    h = jnp.dot(x, w1_ref[...], preferred_element_type=jnp.float32) + b1_ref[...]
    h = _gelu(h, approximate)
    y = jnp.dot(h.astype(x.dtype), w2_ref[...], preferred_element_type=jnp.float32)
    o_ref[...] = (y + b2_ref[...]).astype(o_ref.dtype)


def _mlp_kernel_ksplit(x_ref, w1_ref, b1_ref, w2_ref, b2_ref, o_ref, acc_ref, *,
                       approximate):
    # Hidden dim split across grid axis 1; f32 accumulator in VMEM scratch.
    k = pl.program_id(1)
    x = x_ref[...]
    h = jnp.dot(x, w1_ref[...], preferred_element_type=jnp.float32) + b1_ref[...]
    h = _gelu(h, approximate)
    part = jnp.dot(h.astype(x.dtype), w2_ref[...], preferred_element_type=jnp.float32)

    @pl.when(k == 0)
    def _():
        acc_ref[...] = part          # write-on-first-k: no zero-fill + re-read

    @pl.when(k > 0)
    def _():
        acc_ref[...] += part

    @pl.when(k == pl.num_programs(1) - 1)
    def _():
        o_ref[...] = (acc_ref[...] + b2_ref[...]).astype(o_ref.dtype)


# --------------------------------------------------------------------------
# wrapper
# --------------------------------------------------------------------------
def _round_up(x, m):
    return ((x + m - 1) // m) * m


def _vmem_bytes(tm, th, c_in, c_out, itemsize, ksplit):
    """Estimated double-buffered VMEM working set (bytes)."""
    b = 2 * tm * c_in * itemsize                         # x tile (double buffer)
    b += 2 * tm * c_out * itemsize                       # out tile
    b += 2 * (c_in * th + th * c_out) * itemsize         # w1 / w2 tiles
    b += 2 * 4 * (th + c_out)                            # f32 biases
    b += tm * th * 4                                     # fc1 intermediate (f32)
    if ksplit:
        b += tm * c_out * 4                              # accumulator scratch
    return b


def _tpu_vmem_capacity():
    try:
        return int(pltpu.get_tpu_info().vmem_capacity_bytes)
    except Exception:
        return 64 * 1024 * 1024      # conservative: v7x per-TensorCore VMEM


def _pick_tm(m_round, tm_target, packing):
    tm_eff = min(_round_up(tm_target, packing), m_round)
    tm_eff = max(tm_eff, packing)
    # Keep >=2 row tiles when possible so the "parallel" row axis can shard
    # across v7x's two TensorCores (no effect on single-TC v5e/v6e).
    if m_round <= tm_eff and m_round >= 2 * packing:
        tm_eff = _round_up((m_round + 1) // 2, packing)
    return tm_eff


def mlp_pallas(x, w1, b1, w2, b2, *, tm=512, th=None, approximate_gelu=False):
    """DeiT Mlp forward: fc2(GELU(fc1(x))).

    x: (..., C_in); w1: (C_in, H); b1: (H,); w2: (H, C_out); b2: (C_out,).
    Weights are (in, out) = nn.Linear.weight.T.  Dropout(p=0.0) is identity.
    Set approximate_gelu=True for the tanh/EUP GELU fast path on v6e/v7x.
    """
    lead_shape = x.shape[:-1]
    c_in = x.shape[-1]
    hidden = w1.shape[1]
    c_out = w2.shape[1]

    x2 = x.reshape(-1, c_in)
    m = x2.shape[0]

    itemsize = jnp.dtype(x.dtype).itemsize
    packing = max(8, 32 // itemsize)          # 8 f32, 16 bf16, 32 int8/fp8
    m_round = _round_up(m, packing)

    vmem_cap = _tpu_vmem_capacity()
    vmem_budget = int(vmem_cap * 0.6)         # headroom for Mosaic scratch/sems

    # ---- hidden-dim tiling: resident weights if they fit, else split ------
    user_split = (th is not None) and (th < hidden)
    if user_split:
        split = True
        th_eff = max(128, _round_up(min(th, hidden), 128))   # enforce lane mult.
        tm_eff = _pick_tm(m_round, max(tm, 768), packing)
    else:
        tm_probe = _pick_tm(m_round, tm, packing)
        if (th is not None) or _vmem_bytes(tm_probe, hidden, c_in, c_out,
                                           itemsize, ksplit=False) <= vmem_budget:
            split = False
            th_eff = hidden
            tm_eff = tm_probe
        else:
            split = True
            # v6e: row tile >=768 so streamed-weight bytes are amortized past
            # the compute/bandwidth roofline.
            tm_eff = _pick_tm(m_round, max(tm, 768), packing)
            th_eff = 128
            for cand in (2048, 1536, 1024, 768, 512, 384, 256, 128):
                if cand <= hidden and _vmem_bytes(tm_eff, cand, c_in, c_out,
                                                  itemsize, True) <= vmem_budget:
                    th_eff = cand
                    break

    # ---- padding (exact: GELU(0)=0 so padded hidden columns contribute 0) --
    m_pad = _round_up(m, tm_eff)
    if m_pad != m:
        x2 = jnp.pad(x2, ((0, m_pad - m), (0, 0)))

    h_pad = _round_up(hidden, th_eff) if split else hidden
    w1p, b1p, w2p = w1, b1, w2
    if h_pad != hidden:
        w1p = jnp.pad(w1, ((0, 0), (0, h_pad - hidden)))
        b1p = jnp.pad(b1, ((0, h_pad - hidden),))
        w2p = jnp.pad(w2, ((0, h_pad - hidden), (0, 0)))

    # MXU operands follow the activation dtype (bf16 activations -> bf16 MXU
    # fast path + half the weight DMA bytes); biases stay f32 (f32 accumulate).
    w1p = w1p.astype(x.dtype)
    w2p = w2p.astype(x.dtype)
    b1_2 = b1p.reshape(1, h_pad).astype(jnp.float32)
    b2_2 = b2.reshape(1, c_out).astype(jnp.float32)

    # ---- grid / specs ------------------------------------------------------
    if not split:
        grid = (m_pad // tm_eff,)
        kernel = functools.partial(_mlp_kernel_fused, approximate=approximate_gelu)
        in_specs = [
            pl.BlockSpec((tm_eff, c_in), lambda i: (i, 0)),    # x rows (streamed)
            pl.BlockSpec((c_in, h_pad), lambda i: (0, 0)),     # fc1 W (resident)
            pl.BlockSpec((1, h_pad), lambda i: (0, 0)),        # fc1 b (resident)
            pl.BlockSpec((h_pad, c_out), lambda i: (0, 0)),    # fc2 W (resident)
            pl.BlockSpec((1, c_out), lambda i: (0, 0)),        # fc2 b (resident)
        ]
        out_specs = pl.BlockSpec((tm_eff, c_out), lambda i: (i, 0))
        scratch_shapes = []
        dims = ("parallel",)
        weight_passes = 1
    else:
        grid = (m_pad // tm_eff, h_pad // th_eff)
        kernel = functools.partial(_mlp_kernel_ksplit, approximate=approximate_gelu)
        in_specs = [
            pl.BlockSpec((tm_eff, c_in), lambda i, k: (i, 0)),
            pl.BlockSpec((c_in, th_eff), lambda i, k: (0, k)),
            pl.BlockSpec((1, th_eff), lambda i, k: (0, k)),
            pl.BlockSpec((th_eff, c_out), lambda i, k: (k, 0)),
            pl.BlockSpec((1, c_out), lambda i, k: (0, 0)),
        ]
        out_specs = pl.BlockSpec((tm_eff, c_out), lambda i, k: (i, 0))
        scratch_shapes = [pltpu.VMEM((tm_eff, c_out), jnp.float32)]
        dims = ("parallel", "arbitrary")
        weight_passes = m_pad // tm_eff      # weights re-streamed per row tile

    vmem_needed = _vmem_bytes(tm_eff, th_eff, c_in, c_out, itemsize, split)
    vmem_limit = int(min(max(vmem_needed + (2 << 20), 16 << 20),
                         int(vmem_cap * 0.75)))

    w_bytes = itemsize * (c_in * h_pad + h_pad * c_out) + 4 * (h_pad + c_out)
    cost = pl.CostEstimate(
        flops=2 * m_pad * (c_in * h_pad + h_pad * c_out),
        transcendentals=m_pad * h_pad,
        bytes_accessed=itemsize * m_pad * (c_in + c_out) + weight_passes * w_bytes,
    )

    out = pl.pallas_call(
        kernel,
        out_shape=jax.ShapeDtypeStruct((m_pad, c_out), x.dtype),
        grid_spec=pltpu.PrefetchScalarGridSpec(
            num_scalar_prefetch=0,
            grid=grid,
            in_specs=in_specs,
            out_specs=out_specs,
            scratch_shapes=scratch_shapes,
        ),
        compiler_params=pltpu.CompilerParams(
            dimension_semantics=dims,
            vmem_limit_bytes=vmem_limit,
        ),
        cost_estimate=cost,
    )(x2, w1p, b1_2, w2p, b2_2)

    out = out[:m]
    return out.reshape(*lead_shape, c_out)


# --------------------------------------------------------------------------
# reference + self-test
# --------------------------------------------------------------------------
def mlp_reference(x, w1, b1, w2, b2, approximate=False):
    h = jnp.dot(x, w1) + b1
    if approximate:
        h = 0.5 * h * (1.0 + jnp.tanh(_TANH_C * (h + 0.044715 * h * h * h)))
    else:
        h = 0.5 * h * (1.0 + lax.erf(h * _INV_SQRT2))
    return jnp.dot(h, w2) + b2


if __name__ == "__main__":
    # small shapes consistent with the module: tokens (B, N, C_in)
    B, N = 2, 8
    in_features, hidden_features, out_features = 32, 64, 32

    key = jax.random.PRNGKey(0)
    kx, kw1, kb1, kw2, kb2 = jax.random.split(key, 5)

    x = jax.random.normal(kx, (B, N, in_features), dtype=jnp.float32)
    # synthetic params (weights stored as (in, out) = nn.Linear.weight.T)
    w1 = jax.random.normal(kw1, (in_features, hidden_features), jnp.float32) * 0.05
    b1 = jax.random.normal(kb1, (hidden_features,), jnp.float32) * 0.05
    w2 = jax.random.normal(kw2, (hidden_features, out_features), jnp.float32) * 0.05
    b2 = jax.random.normal(kb2, (out_features,), jnp.float32) * 0.05

    # 1) default path: resident weights, fused kernel, exact erf GELU
    y = mlp_pallas(x, w1, b1, w2, b2)
    jax.block_until_ready(y)
    y_ref = mlp_reference(x, w1, b1, w2, b2)
    assert y.shape == (B, N, out_features)
    assert jnp.allclose(y, y_ref, atol=1e-5, rtol=1e-5), "fused/exact mismatch"

    # 2) tanh-approximate GELU (EUP fast path recommended for v6e/v7x)
    y_a = mlp_pallas(x, w1, b1, w2, b2, approximate_gelu=True)
    jax.block_until_ready(y_a)
    y_a_ref = mlp_reference(x, w1, b1, w2, b2, approximate=True)
    assert jnp.allclose(y_a, y_a_ref, atol=1e-5, rtol=1e-5), "approx-gelu mismatch"

    # 3) hidden-dim split path (k-grid > 1, write-on-first-k accumulator)
    H2 = 256
    kw3, kb3, kw4 = jax.random.split(kw2, 3)
    w1b = jax.random.normal(kw3, (in_features, H2), jnp.float32) * 0.05
    b1b = jax.random.normal(kb3, (H2,), jnp.float32) * 0.05
    w2b = jax.random.normal(kw4, (H2, out_features), jnp.float32) * 0.05
    y_s = mlp_pallas(x, w1b, b1b, w2b, b2, th=128)
    jax.block_until_ready(y_s)
    y_s_ref = mlp_reference(x, w1b, b1b, w2b, b2)
    assert jnp.allclose(y_s, y_s_ref, atol=1e-5, rtol=1e-5), "k-split mismatch"

    # 4) bf16 activation/weight path (mixed precision, loose tolerance)
    y_b = mlp_pallas(x.astype(jnp.bfloat16), w1, b1, w2, b2)
    jax.block_until_ready(y_b)
    assert jnp.allclose(y_b.astype(jnp.float32), y_ref, atol=2e-2, rtol=5e-2), \
        "bf16 mismatch"

    print("KERNEL_OK")
</pallas_src>

<mosaic_0001>
module attributes {stable_mosaic.version = 11 : i64} {
  func.func @_mlp_kernel_fused(%arg0: i32, %arg1: memref<8x32xf32, #tpu.memory_space<vmem>>, %arg2: memref<32x64xf32, #tpu.memory_space<vmem>>, %arg3: memref<1x64xf32, #tpu.memory_space<vmem>>, %arg4: memref<64x32xf32, #tpu.memory_space<vmem>>, %arg5: memref<1x32xf32, #tpu.memory_space<vmem>>, %arg6: memref<8x32xf32, #tpu.memory_space<vmem>>) attributes {dimension_semantics = [#tpu.dimension_semantics<parallel>], iteration_bounds = array<i64: 2>, scalar_prefetch = 0 : i64, scratch_operands = 0 : i64, tpu.core_type = #tpu.core_type<tc>, window_params = [{transform_indices = @transform_0, window_bounds = array<i64: 8, 32>}, {pipeline_mode = #tpu.pipeline_mode<synchronous>, transform_indices = @transform_1, window_bounds = array<i64: 32, 64>}, {pipeline_mode = #tpu.pipeline_mode<synchronous>, transform_indices = @transform_2, window_bounds = array<i64: 1, 64>}, {pipeline_mode = #tpu.pipeline_mode<synchronous>, transform_indices = @transform_3, window_bounds = array<i64: 64, 32>}, {pipeline_mode = #tpu.pipeline_mode<synchronous>, transform_indices = @transform_4, window_bounds = array<i64: 1, 32>}, {transform_indices = @transform_5, window_bounds = array<i64: 8, 32>}]} {
    %c0 = arith.constant 0 : index
    %c0_0 = arith.constant 0 : index
    %0 = vector.load %arg1[%c0, %c0_0] : memref<8x32xf32, #tpu.memory_space<vmem>>, vector<8x32xf32>
    %c0_1 = arith.constant 0 : index
    %c0_2 = arith.constant 0 : index
    %1 = vector.load %arg2[%c0_1, %c0_2] : memref<32x64xf32, #tpu.memory_space<vmem>>, vector<32x64xf32>
    %cst = arith.constant dense<0.000000e+00> : vector<8x64xf32>
    %2 = tpu.matmul %0, %1, %cst {dimension_numbers = #tpu.dot_dimension_numbers<[1], [0], [0], [1], [0, 0, 1, 1], [], []>} : vector<8x32xf32>, vector<32x64xf32>, vector<8x64xf32> -> vector<8x64xf32>
    %c0_3 = arith.constant 0 : index
    %c0_4 = arith.constant 0 : index
    %3 = vector.load %arg3[%c0_3, %c0_4] : memref<1x64xf32, #tpu.memory_space<vmem>>, vector<1x64xf32>
    %4 = vector.broadcast %3 : vector<1x64xf32> to vector<8x64xf32>
    %5 = arith.addf %2, %4 : vector<8x64xf32>
    %cst_5 = arith.constant 5.000000e-01 : f32
    %6 = vector.broadcast %cst_5 : f32 to vector<8x64xf32>
    %7 = arith.mulf %6, %5 : vector<8x64xf32>
    %cst_6 = arith.constant 0.707106769 : f32
    %8 = vector.broadcast %cst_6 : f32 to vector<8x64xf32>
    %9 = arith.mulf %5, %8 : vector<8x64xf32>
    %10 = math.erf %9 : vector<8x64xf32>
    %cst_7 = arith.constant 1.000000e+00 : f32
    %11 = vector.broadcast %cst_7 : f32 to vector<8x64xf32>
    %12 = arith.addf %11, %10 : vector<8x64xf32>
    %13 = arith.mulf %7, %12 : vector<8x64xf32>
    %c0_8 = arith.constant 0 : index
    %c0_9 = arith.constant 0 : index
    %14 = vector.load %arg4[%c0_8, %c0_9] : memref<64x32xf32, #tpu.memory_space<vmem>>, vector<64x32xf32>
    %cst_10 = arith.constant dense<0.000000e+00> : vector<8x32xf32>
    %15 = tpu.matmul %13, %14, %cst_10 {dimension_numbers = #tpu.dot_dimension_numbers<[1], [0], [0], [1], [0, 0, 1, 1], [], []>} : vector<8x64xf32>, vector<64x32xf32>, vector<8x32xf32> -> vector<8x32xf32>
    %c0_11 = arith.constant 0 : index
    %c0_12 = arith.constant 0 : index
    %16 = vector.load %arg5[%c0_11, %c0_12] : memref<1x32xf32, #tpu.memory_space<vmem>>, vector<1x32xf32>
    %17 = vector.broadcast %16 : vector<1x32xf32> to vector<8x32xf32>
    %18 = arith.addf %15, %17 : vector<8x32xf32>
    %c0_13 = arith.constant 0 : index
    %c0_14 = arith.constant 0 : index
    %19 = vector.load %arg6[%c0_13, %c0_14] : memref<8x32xf32, #tpu.memory_space<vmem>>, vector<8x32xf32>
    tpu.vector_store %arg6[%c0_13, %c0_14], %18 {strides = array<i32>} : memref<8x32xf32, #tpu.memory_space<vmem>>, vector<8x32xf32>,
    return
  }
  func.func @transform_0(%arg0: i32) -> (i32, i32) {
    %c0_i32 = arith.constant 0 : i32
    %c0_i32_0 = arith.constant 0 : i32
    return %arg0, %c0_i32 : i32, i32
  }
  func.func @transform_1(%arg0: i32) -> (i32, i32) {
    %c0_i32 = arith.constant 0 : i32
    %c0_i32_0 = arith.constant 0 : i32
    %c0_i32_1 = arith.constant 0 : i32
    return %c0_i32, %c0_i32_0 : i32, i32
  }
  func.func @transform_2(%arg0: i32) -> (i32, i32) {
    %c0_i32 = arith.constant 0 : i32
    %c0_i32_0 = arith.constant 0 : i32
    %c0_i32_1 = arith.constant 0 : i32
    return %c0_i32, %c0_i32_0 : i32, i32
  }
  func.func @transform_3(%arg0: i32) -> (i32, i32) {
    %c0_i32 = arith.constant 0 : i32
    %c0_i32_0 = arith.constant 0 : i32
    %c0_i32_1 = arith.constant 0 : i32
    return %c0_i32, %c0_i32_0 : i32, i32
  }
  func.func @transform_4(%arg0: i32) -> (i32, i32) {
    %c0_i32 = arith.constant 0 : i32
    %c0_i32_0 = arith.constant 0 : i32
    %c0_i32_1 = arith.constant 0 : i32
    return %c0_i32, %c0_i32_0 : i32, i32
  }
  func.func @transform_5(%arg0: i32) -> (i32, i32) {
    %c0_i32 = arith.constant 0 : i32
    %c0_i32_0 = arith.constant 0 : i32
    return %arg0, %c0_i32 : i32, i32
  }
}

</mosaic_0001>

<bundles_post_ra>
// kernel: tpu_custom_call.1
= control target key start
LH: loop header
LB: loop body
LE: loop exit
PB: predicated region body
PF: predicated region fallthrough
CT: control target
= control target key end

     0   :  { %10 = vsyncpa [#allocation3], 0  ;;  %s807_s0 = inlined_call_operand.vmem [shape: f32[16,32], index: 0, kind: input, shape index: {}]   ;;  %s808_s1 = inlined_call_operand.vmem [shape: f32[32,64], index: 1, kind: input, shape index: {}]   ;;  %s809_s2 = inlined_call_operand.vmem [shape: f32[1,64], index: 2, kind: input, shape index: {}]   ;;  %s810_s3 = inlined_call_operand.vmem [shape: f32[64,32], index: 3, kind: input, shape index: {}]   ;;  %s811_s4 = inlined_call_operand.vmem [shape: f32[1,32], index: 4, kind: input, shape index: {}]   ;;  %s812_s5 = inlined_call_operand.hbm [shape: f32[16,32], index: 5, kind: output, shape index: {}]  }
   0x1   :  { %12 = vsyncpa [#allocation3 + $0x1], 0  ;;  %s670_s18 = smov 0   ;;  %s672_s19 = smov 0  }
   0x2   :  { %s674_s20 = smov 0   ;;  %s676_s21 = smov 0  }
   0x3 LB: > { %s691_s22 = sadd.s32 4294967295, %s635_s21   ;;  %s474_s23 = sadd.s32 4294967294, %s635_s21   ;;  %s635_s21 = sphi %s676_s21, %s818_s21   ;;  %s631_s20 = sphi %s674_s20, %s817_s20   ;;  %s627_s19 = sphi %s672_s19, %s816_s19   ;;  %s623_s18 = sphi %s670_s18, %s815_s18  }
   0x4   : > { %s695_s24 = sadd.s32 1, %s635_s21   ;;  %s135_s25 = sadd.s32 1, %s631_s20 }
   0x5   : > { %s132_s26 = ssub.s32 %s635_s21, %s695_s24  ;;  %p145_p0 = scmp.ne.s32.totalorder %s631_s20, %s627_s19 }
   0x6   : > { %p133_p1 = scmp.eq.s32.totalorder %s132_s26, 0  ;;  %p146_p2 = scmp.eq.s32.totalorder %s691_s22, 1 }
   0x7   : > { %p151_p3 = scmp.ne.s32.totalorder %s627_s19, %s623_s18  ;;  %p152_p4 = scmp.eq.s32.totalorder %s474_s23, 1 }
   0x8   : > { %s706_s27 = scalar_select %p133_p1, %s631_s20, %s135_s25  }
   0x9   : > { %p708_p5 = por %p146_p2, %p145_p0  ;;  %p712_p6 = por %p152_p4, %p151_p3 }
   0xa   : > { %p477_p7 = scmp.ge.s32.totalorder %s635_s21, 1  ;;  %p189_p8 = scmp.lt.s32.totalorder %s635_s21, 3 }
   0xc   : > { %p190_p9 = pnand %p477_p7, %p189_p8 }
   0xd   : > { %p216_p10 = scmp.lt.s32.totalorder (!%p190_p9), %s691_s22, 1  ;;  %s213_s26 = sand.u32 (!%p190_p9), 1, %s627_s19  }
   0xe   : > { %193 = sbr.rel (%p190_p9) target bundleno = 451 (0x1c3), region = 40  ;;  %s478_s30 = sshll.u32 (!%p190_p9), %s213_s26, 3 }
   0xf   : > { %s485_s8 = sshll.u32 (!%p190_p9), %s691_s22, 7  ;;  %s402_s14 = scalar_lea.sflag (!%p190_p9), [#allocation3], %s213_s26 }
  0x10   : > { %s771_s13 = scalar_lea.hbm (!%p190_p9), %s812_s5, %s485_s8 }
  0x13   : > { %v224_v0 = vld [vmem:[%s808_s1 + $0x18] sm:$0xff]  ;;  %v637_v1 = vmov 0.0   ;;  %v223_v2 = vld [vmem:[%s808_s1 + $0x10] sm:$0xff]  ;;  %vm638_vm0 = vmmov 0   ;;  %s217_s9 = scalar_select %p216_p10, %s691_s22, 1  ;;  %v222_v3 = vld [vmem:[%s808_s1 + $0x8] sm:$0xff] }
  0x14   : > { %502 = vmatprep.subr.mxu0 %v637_v1  ;;  %510 = vmatprep.mubr.msk.f32.mxu0 %vm638_vm0, %v637_v1  ;;  %v221_v4 = vld [vmem:[%s808_s1] sm:$0xff]  ;;  %vm232_vm1 = vcmask 261120   ;;  %v318_v6 = vld [vmem:[%s810_s3 + $0x38] sm:$0xff]  ;;  %v317_v7 = vld [vmem:[%s810_s3 + $0x30] sm:$0xff]  ;;  %vm326_vm2 = vcmask 523264   ;;  %s639_s22 = smov [#allocation2]  }
  0x15   : > { %503 = vmatpush3.msra.mxu0 %v224_v0  ;;  %513 = vmatprep.subr.mxu1 %v637_v1  ;;  %s479_s12 = sshll.u32 %s217_s9, 3  ;;  %v316_v8 = vld [vmem:[%s810_s3 + $0x28] sm:$0xff]  ;;  %v315_v9 = vld [vmem:[%s810_s3 + $0x20] sm:$0xff]  ;;  %v314_v10 = vld [vmem:[%s810_s3 + $0x18] sm:$0xff]  ;;  %s215_s9 = scalar_lea.vmem [#allocation2], %s478_s30 }
  0x16   : > { %504 = vmatprep.subr.mxu0 %v637_v1  ;;  %529 = vmatprep.mubr.msk.f32.mxu1 %vm638_vm0, %v637_v1  ;;  %s219_s17 = scalar_lea.vmem %s807_s0, %s479_s12  ;;  %v313_v11 = vld [vmem:[%s810_s3 + $0x10] sm:$0xff]  ;;  %v312_v12 = vld [vmem:[%s810_s3 + $0x8] sm:$0xff]  ;;  %v311_v13 = vld [vmem:[%s810_s3] sm:$0xff]  ;;  %s415_s10 = sshll.u32 %s215_s9, 4  ;;  %s416_s10 = int_to_ptr.vmem [resolvable:$true] %s415_s10 }
  0x17   : > { %505 = vmatpush3.msra.mxu0 %v223_v2  ;;  %v220_v5 = vld [vmem:[%s219_s17] sm:$0xff]  ;;  %514 = vmatpush3.msra.mxu1 %v318_v6  ;;  %s575_s15 = scalar_lea.vmem %s416_s10, 128  ;;  %s579_s16 = sshll.u32 %s639_s22, 4  ;;  %s580_s16 = int_to_ptr.vmem [resolvable:$false] %s579_s16 }
  0x18   : > { %506 = vmatprep.subr.mxu0 %v637_v1  ;;  %515 = vmatprep.subr.mxu1 %v637_v1  ;;  %v480_v14 = vld [vmem:[%s809_s2] ss:$0 sm:$0xff]  ;;  %p576_p11 = scmp.ne.s32.totalorder %s416_s10, %s575_s15  ;;  %s581_s17 = scalar_lea.vmem %s580_s16, 256 }
  0x19   : > { %507 = vmatpush3.msra.mxu0 %v222_v3  ;;  %516 = vmatpush3.msra.mxu1 %v317_v7  ;;  %v482_v23 = vld [vmem:[%s811_s4] ss:$0 sm:$0xff]  ;;  %p582_p0 = scmp.lt.s32.totalorder %s416_s10, %s580_s16  ;;  %p583_p1 = scmp.lt.s32.totalorder %s581_s17, %s575_s15 }
  0x1a   : > { %508 = vmatprep.subr.mxu0 %v637_v1  ;;  %517 = vmatprep.subr.mxu1 %v637_v1  ;;  %p577_p12 = pnand %p576_p11, %p708_p5 }
  0x1b   : > { %509 = vmatpush3.msra.mxu0 %v221_v4  ;;  %518 = vmatpush3.msra.mxu1 %v316_v8  ;;  %p584_p2 = por %p583_p1, %p582_p0 }
  0x1c   : > { %511 = vmatmul.mubr.msk.f32.vlgmr.msra.gmra.mxu0 %vm232_vm1, %v220_v5  ;;  %519 = vmatprep.subr.mxu1 %v637_v1  ;;  %p578_p13 = pneg %p577_p12 }
  0x1d   : > { %520 = vmatpush3.msra.mxu1 %v315_v9 }
  0x1e   : > { %521 = vmatprep.subr.mxu1 %v637_v1  ;;  %p585_p3 = pnand %p584_p2, %p578_p13 }
  0x1f   : > { %522 = vmatpush3.msra.mxu1 %v314_v10 }
  0x20   : > { %523 = vmatprep.subr.mxu1 %v637_v1 }
  0x21   : > { %524 = vmatpush3.msra.mxu1 %v313_v11 }
  0x22   : > { %525 = vmatprep.subr.mxu1 %v637_v1 }
  0x23   : > { %526 = vmatpush3.msra.mxu1 %v312_v12 }
  0x24   : > { %527 = vmatprep.subr.mxu1 %v637_v1 }
  0x25   : > { %528 = vmatpush3.msra.mxu1 %v311_v13 }
  0xdc   : > { %v302_v15 = vpop.f32.mrf.mxu0 }
  0xdd   : > { %v303_v16 = vadd.f32 %v480_v14, %v302_v15 }
  0xde   : > { %v512_v17 = vpop.f32.mrf.mxu0 }
  0xdf   : > { %v307_v18 = vmul.f32 0.70710677, %v303_v16  ;;  %v306_v20 = vmul.f32 0.5, %v303_v16 }
  0xe1   : > { %573 = verf.f32 %v307_v18 }
  0xee   : > { %v574_v19 = vpop.eup %573 }
  0xef   : > { %v309_v21 = vadd.f32 1.0, %v574_v19 }
  0xf1   : > { %v310_v22 = vmul.f32 %v309_v21, %v306_v20 }
  0xf3   : > { %530 = vmatmul.mubr.msk.f32.vlgmr.msra.gmra.mxu1 %vm326_vm2, %v310_v22 }
 0x1b3   : > { %v396_v24 = vpop.f32.mrf.mxu1 }
 0x1b4   : > { %v397_v25 = vadd.f32 %v482_v23, %v396_v24 }
 0x1b5   : > { %v531_v26 = vpop.f32.mrf.mxu1 }
 0x1b6   : > { %400 = vst.msk [vmem:[%s215_s9] sm:$0xff] %vm232_vm1, %v397_v25 }
 0x1b7   : > { %588 = shalt.err (!%p585_p3)
}
 0x1b8   : > { %s589_s23 = scalar_lea.hbm %s771_s13, 128  ;;  %s593_s30 = scalar_lea.hbm %s812_s5, 256 }
 0x1b9   : > { %p590_p4 = scmp.ne.s32.totalorder %s771_s13, %s589_s23  ;;  %p594_p9 = scmp.lt.s32.totalorder %s771_s13, %s812_s5 }
 0x1ba   : > { %p595_p10 = scmp.lt.s32.totalorder %s593_s30, %s589_s23 }
 0x1bb   : > { %p591_p7 = pnand %p590_p4, %p708_p5 }
 0x1bc   : > { %p596_p11 = por %p595_p10, %p594_p9 }
 0x1bd   : > { %p592_p8 = pneg %p591_p7 }
 0x1bf   : > { %p597_p12 = pnand %p596_p11, %p592_p8 }
 0x1c1   : > { %600 = shalt.err (!%p597_p12)
}
 0x1c2   : > { %532 = dma.vmem_to_hbm [thread:$0]  (%p708_p5), %s416_s10, 128, %s771_s13, %s402_s14  }
 0x1c3 PF: > { %p538_p13 = scmp.ge.s32.totalorder %s635_s21, 2  ;;  %s427_s8 = sand.u32 1, %s623_s18  }
 0x1c4   : > { %s428_s9 = scalar_lea.sflag [#allocation3], %s427_s8 }
 0x1c5   : > { %p535_p0 = pnand %p538_p13, %p712_p6 }
 0x1c7   : > { %p536_p1 = pneg %p535_p0 }
 0x1c9   : > { %618 = dma.done.wait (%p536_p1), %s428_s9, 128  }
 0x1ca   : > { %620 = vsyncadd (%p536_p1), %s428_s9, 4294967168  ;;  %p15_p2 = scmp.ge.s32.totalorder %s695_s24, 4   ;;  %s815_s18 = smov %s627_s19 }
 0x1cb   : > { %s816_s19 = smov %s631_s20  ;;  %s817_s20 = smov %s706_s27 }
 0x1cc   : > { %s818_s21 = smov %s695_s24  ;;  %17 = sbr.rel (!%p15_p2) target bundleno = 3 (0x3), region = 75 }
 0x1d1   :  { %433 = vsyncpa [#allocation3], 1 }
 0x1d2   :  { %435 = vsyncpa [#allocation3 + $0x1], 1 }

</bundles_post_ra>
